<compile_context>
chip_gen: v7x
topology: tpu7x:2x2x1
jax: 0.10.0
libtpu: 0.0.40
codegen_flags: <defaults>
</compile_context>

<pallas_src>
import jax
import jax.numpy as jnp
from jax.experimental import pallas as pl
from jax.experimental.pallas import tpu as pltpu


# ----------------------------------------------------------------------------
# Constants for the (invented) encoder
# ----------------------------------------------------------------------------
ENC_DIM = 32          # true encoder output width
ENC_PAD = 128         # lane-padded encoder output width inside the kernel
C1, C2 = 8, 16        # conv channel counts
KS, STRIDE, PAD = 3, 2, 1


def _conv_out(n, k=KS, s=STRIDE, p=PAD):
    return (n + 2 * p - k) // s + 1


# ----------------------------------------------------------------------------
# Single fused Pallas kernel: inversion + conv1 + conv2 + fc
#   x_ref    : (1, 2HW) f32   concatenated [prev, curr] screens (lane-dense)
#   m1_ref   : (2HW, N1) bf16 conv1 dense matrix with 1-x inversion folded in
#   m2_ref   : (N1, N2) bf16  conv2 dense matrix
#   fcw_ref  : (N2, 128) bf16 fc weights, lane-padded
#   bias_ref : (1, N1+N2+128) f32 packed biases [b1 | b2 | fc_b(padded)]
#   inv_ref  : (1, 2HW) f32   required "1 - input_tensor" output (flat)
#   enc_ref  : (1, 128) f32   lane-padded encoding output
# ----------------------------------------------------------------------------
def _fused_sensor_kernel(x_ref, m1_ref, m2_ref, fcw_ref, bias_ref,
                         inv_ref, enc_ref):
    x = x_ref[...]                              # (1, 2HW) f32
    n1 = m1_ref.shape[1]
    n2 = m2_ref.shape[1]

    # Required "1 - input_tensor" output: one unmasked lane-dense store, f32.
    inv_ref[...] = 1.0 - x

    # Static, 128-aligned slices of the packed bias blob.
    b1 = bias_ref[:, 0:n1]
    b2 = bias_ref[:, n1:n1 + n2]
    fcb = bias_ref[:, n1 + n2:n1 + n2 + ENC_PAD]

    # conv1 with the inversion folded in (weights negated, ones-response in
    # bias):  h1 = (1 - x) @ M1 + b1_exp  ==  x @ (-M1) + b1_folded.
    h1 = jnp.dot(x.astype(jnp.bfloat16), m1_ref[...],
                 preferred_element_type=jnp.float32) + b1
    h1 = jnp.maximum(h1, 0.0)

    # conv2 as a dense matmul.
    h2 = jnp.dot(h1.astype(jnp.bfloat16), m2_ref[...],
                 preferred_element_type=jnp.float32) + b2
    h2 = jnp.maximum(h2, 0.0)

    # fc, lane-padded to 128 output columns (unmasked store).
    enc_ref[...] = jnp.dot(h2.astype(jnp.bfloat16), fcw_ref[...],
                           preferred_element_type=jnp.float32) + fcb


_VMEM = pl.BlockSpec(memory_space=pltpu.MemorySpace.VMEM)


def _fused_forward(prep, x_flat):
    in_dim = x_flat.shape[1]
    n1 = prep["m1"].shape[1]
    n2 = prep["m2"].shape[1]

    # Advisory cost hint: tiny matmuls, weight-stream dominated.
    flops = 2 * (in_dim * n1 + n1 * n2 + n2 * ENC_PAD)
    bytes_accessed = (
        2 * (in_dim * n1 + n1 * n2 + n2 * ENC_PAD)      # bf16 weights
        + 4 * (n1 + n2 + ENC_PAD)                       # f32 bias blob
        + 4 * (2 * in_dim + ENC_PAD))                   # f32 in/out activations

    inv_flat, enc_pad = pl.pallas_call(
        _fused_sensor_kernel,
        out_shape=(
            jax.ShapeDtypeStruct((1, in_dim), jnp.float32),   # inverted, flat
            jax.ShapeDtypeStruct((1, ENC_PAD), jnp.float32),  # padded encoding
        ),
        in_specs=[_VMEM] * 5,
        out_specs=(_VMEM, _VMEM),
        cost_estimate=pl.CostEstimate(
            flops=flops, transcendentals=0, bytes_accessed=bytes_accessed),
    )(x_flat, prep["m1"], prep["m2"], prep["fc_w"], prep["bias"])
    return inv_flat, enc_pad


# ----------------------------------------------------------------------------
# Parameter init + one-time prep (dense conv matrices, inversion fold,
# bf16 weight cast, bias packing, lane padding)
# ----------------------------------------------------------------------------
def init_encoder_params(key, h=16, w=16):
    ho1, wo1 = _conv_out(h), _conv_out(w)
    ho2, wo2 = _conv_out(ho1), _conv_out(wo1)
    fc_in = C2 * ho2 * wo2                  # derived, not hard-coded
    k1, k2, k3 = jax.random.split(key, 3)
    return {
        "conv1_w": 0.1 * jax.random.normal(k1, (C1, 2, KS, KS), jnp.float32),
        "conv1_b": jnp.zeros((C1,), jnp.float32),
        "conv2_w": 0.1 * jax.random.normal(k2, (C2, C1, KS, KS), jnp.float32),
        "conv2_b": jnp.zeros((C2,), jnp.float32),
        "fc_w": 0.1 * jax.random.normal(k3, (fc_in, ENC_DIM), jnp.float32),
        "fc_b": jnp.zeros((ENC_DIM,), jnp.float32),
    }


def _conv_to_dense(weight, in_shape):
    """Exact dense (in_dim, out_dim) matrix of a zero-padded strided conv."""
    cin, h, w = in_shape
    in_dim = cin * h * w
    eye = jnp.eye(in_dim, dtype=jnp.float32).reshape(in_dim, cin, h, w)
    out = jax.lax.conv_general_dilated(
        eye, weight, window_strides=(STRIDE, STRIDE),
        padding=[(PAD, PAD), (PAD, PAD)],
        dimension_numbers=("NCHW", "OIHW", "NCHW"),
        precision=jax.lax.Precision.HIGHEST)
    return out.reshape(in_dim, -1)          # flatten output (Cout, Ho, Wo) c-major


def prepare_params(raw, h, w):
    """One-time layout/weight prep (hoisted out of the forward)."""
    ho1, wo1 = _conv_out(h), _conv_out(w)
    ho2, wo2 = _conv_out(ho1), _conv_out(wo1)
    in_dim = 2 * h * w
    n1 = C1 * ho1 * wo1
    n2 = C2 * ho2 * wo2

    # conv1 as a single dense matrix over the concatenated [prev, curr] input,
    # with the 1 - x inversion folded in (fold done in f32 for accuracy).
    m1_lin = _conv_to_dense(raw["conv1_w"], (2, h, w))          # (2hw, n1)
    b1_exp = jnp.repeat(raw["conv1_b"], ho1 * wo1)[None, :]
    b1 = jnp.ones((1, in_dim), jnp.float32) @ m1_lin + b1_exp   # ones-response fold
    m1 = -m1_lin                                                # inversion fold

    # conv2 as dense matrix.
    m2 = _conv_to_dense(raw["conv2_w"], (C1, ho1, wo1))         # (n1, n2)
    b2 = jnp.repeat(raw["conv2_b"], ho2 * wo2)[None, :]

    # fc, lane-padded to 128 output columns.
    fc_in, n_fc = raw["fc_w"].shape
    assert fc_in == n2, "fc input dim must match conv output size"
    assert n_fc == ENC_DIM
    fc_w = jnp.zeros((fc_in, ENC_PAD), jnp.float32).at[:, :n_fc].set(raw["fc_w"])
    fc_b_pad = jnp.zeros((1, ENC_PAD), jnp.float32).at[0, :n_fc].set(raw["fc_b"])

    # Pack biases into one lane-dense f32 blob: [b1 | b2 | fc_b_pad].
    bias = jnp.concatenate([b1, b2, fc_b_pad], axis=1)          # (1, n1+n2+128)

    return {
        "m1": m1.astype(jnp.bfloat16),       # (2hw, n1) bf16
        "m2": m2.astype(jnp.bfloat16),       # (n1, n2)  bf16
        "fc_w": fc_w.astype(jnp.bfloat16),   # (n2, 128) bf16
        "bias": bias,                        # (1, n1+n2+128) f32
    }


# ----------------------------------------------------------------------------
# Forward (mirrors Sensor_not_quantized_level_A.forward), jitted end-to-end
# ----------------------------------------------------------------------------
@jax.jit
def sensor_forward(prep, prev_screen, curr_screen):
    """prev_screen, curr_screen: (1, H, W) float32 in [0, 1].

    Returns (encoded, curr_screen, 1 - input_tensor) like the PyTorch module.
    """
    h, w = curr_screen.shape[-2], curr_screen.shape[-1]
    # Concatenated [prev, curr] flat input (matches NCHW concat-then-flatten).
    x_flat = jnp.concatenate(
        [prev_screen.reshape(1, h * w), curr_screen.reshape(1, h * w)], axis=1)
    inv_flat, enc_pad = _fused_forward(prep, x_flat)
    inverted = inv_flat.reshape(1, 2, h, w)
    encoded = enc_pad[:, :ENC_DIM]
    return encoded, curr_screen, inverted


# ----------------------------------------------------------------------------
# Pure-JAX reference (for correctness check only; f32 end-to-end)
# ----------------------------------------------------------------------------
def reference_forward(raw, prev_screen, curr_screen, h, w):
    x = jnp.concatenate((prev_screen, curr_screen), axis=0).reshape(1, 2, h, w)
    inv = 1.0 - x
    y = jax.lax.conv_general_dilated(
        inv, raw["conv1_w"], (STRIDE, STRIDE), [(PAD, PAD), (PAD, PAD)],
        dimension_numbers=("NCHW", "OIHW", "NCHW"),
        precision=jax.lax.Precision.HIGHEST)
    y = jax.nn.relu(y + raw["conv1_b"][None, :, None, None])
    y = jax.lax.conv_general_dilated(
        y, raw["conv2_w"], (STRIDE, STRIDE), [(PAD, PAD), (PAD, PAD)],
        dimension_numbers=("NCHW", "OIHW", "NCHW"),
        precision=jax.lax.Precision.HIGHEST)
    y = jax.nn.relu(y + raw["conv2_b"][None, :, None, None])
    enc = y.reshape(1, -1) @ raw["fc_w"] + raw["fc_b"][None, :]
    return enc, inv


# ----------------------------------------------------------------------------
# Main
# ----------------------------------------------------------------------------
if __name__ == "__main__":
    H, W = 16, 16
    key = jax.random.PRNGKey(0)
    k_prev, k_curr, k_params = jax.random.split(key, 3)

    # Synthetic deterministic "screens" (stand-ins for get_screen(env)).
    prev_screen = jax.random.uniform(k_prev, (1, H, W), jnp.float32)
    curr_screen = jax.random.uniform(k_curr, (1, H, W), jnp.float32)

    raw_params = init_encoder_params(k_params, H, W)
    prep = prepare_params(raw_params, H, W)           # one-time weight prep

    encoded, curr_out, inverted = sensor_forward(prep, prev_screen, curr_screen)
    jax.block_until_ready((encoded, curr_out, inverted))

    # Shape checks (module contract).
    assert encoded.shape == (1, ENC_DIM)
    assert curr_out.shape == (1, H, W)
    assert inverted.shape == (1, 2, H, W)

    # Numerical check against a pure-JAX f32 reference of the same encoder.
    enc_ref, inv_ref = reference_forward(raw_params, prev_screen, curr_screen, H, W)
    # Inversion path is exact f32 in the kernel.
    assert float(jnp.max(jnp.abs(inverted - inv_ref))) < 1e-6
    # Encoder path uses bf16 weights/activations with f32 accumulation.
    assert float(jnp.max(jnp.abs(encoded - enc_ref))) < 2.5e-2

    print("KERNEL_OK")
</pallas_src>

<mosaic_0001>
module attributes {stable_mosaic.version = 11 : i64} {
  func.func @_fused_sensor_kernel(%arg0: memref<1x512xf32, #tpu.memory_space<vmem>>, %arg1: memref<512x512xbf16, #tpu.memory_space<vmem>>, %arg2: memref<512x256xbf16, #tpu.memory_space<vmem>>, %arg3: memref<256x128xbf16, #tpu.memory_space<vmem>>, %arg4: memref<1x896xf32, #tpu.memory_space<vmem>>, %arg5: memref<1x512xf32, #tpu.memory_space<vmem>>, %arg6: memref<1x128xf32, #tpu.memory_space<vmem>>) attributes {dimension_semantics = [], scalar_prefetch = 0 : i64, scratch_operands = 0 : i64, tpu.core_type = #tpu.core_type<tc>} {
    %c0 = arith.constant 0 : index
    %c0_0 = arith.constant 0 : index
    %0 = vector.load %arg0[%c0, %c0_0] : memref<1x512xf32, #tpu.memory_space<vmem>>, vector<1x512xf32>
    %cst = arith.constant 1.000000e+00 : f32
    %1 = vector.broadcast %cst : f32 to vector<1x512xf32>
    %2 = arith.subf %1, %0 : vector<1x512xf32>
    %c0_1 = arith.constant 0 : index
    %c0_2 = arith.constant 0 : index
    %3 = vector.load %arg5[%c0_1, %c0_2] : memref<1x512xf32, #tpu.memory_space<vmem>>, vector<1x512xf32>
    tpu.vector_store %arg5[%c0_1, %c0_2], %2 {strides = array<i32>} : memref<1x512xf32, #tpu.memory_space<vmem>>, vector<1x512xf32>,
    %c0_3 = arith.constant 0 : index
    %c0_4 = arith.constant 0 : index
    %4 = vector.load %arg4[%c0_3, %c0_4] : memref<1x896xf32, #tpu.memory_space<vmem>>, vector<1x512xf32>
    %c0_5 = arith.constant 0 : index
    %c512 = arith.constant 512 : index
    %5 = vector.load %arg4[%c0_5, %c512] : memref<1x896xf32, #tpu.memory_space<vmem>>, vector<1x256xf32>
    %c0_6 = arith.constant 0 : index
    %c768 = arith.constant 768 : index
    %6 = vector.load %arg4[%c0_6, %c768] : memref<1x896xf32, #tpu.memory_space<vmem>>, vector<1x128xf32>
    %7 = arith.truncf %0 : vector<1x512xf32> to vector<1x512xbf16>
    %c0_7 = arith.constant 0 : index
    %c0_8 = arith.constant 0 : index
    %8 = vector.load %arg1[%c0_7, %c0_8] : memref<512x512xbf16, #tpu.memory_space<vmem>>, vector<512x512xbf16>
    %cst_9 = arith.constant dense<0.000000e+00> : vector<1x512xf32>
    %9 = tpu.matmul %7, %8, %cst_9 {dimension_numbers = #tpu.dot_dimension_numbers<[1], [0], [0], [1], [0, 0, 1, 1], [], []>} : vector<1x512xbf16>, vector<512x512xbf16>, vector<1x512xf32> -> vector<1x512xf32>
    %10 = arith.addf %9, %4 : vector<1x512xf32>
    %cst_10 = arith.constant 0.000000e+00 : f32
    %11 = vector.broadcast %cst_10 : f32 to vector<1x512xf32>
    %12 = arith.maximumf %10, %11 : vector<1x512xf32>
    %13 = arith.truncf %12 : vector<1x512xf32> to vector<1x512xbf16>
    %c0_11 = arith.constant 0 : index
    %c0_12 = arith.constant 0 : index
    %14 = vector.load %arg2[%c0_11, %c0_12] : memref<512x256xbf16, #tpu.memory_space<vmem>>, vector<512x256xbf16>
    %cst_13 = arith.constant dense<0.000000e+00> : vector<1x256xf32>
    %15 = tpu.matmul %13, %14, %cst_13 {dimension_numbers = #tpu.dot_dimension_numbers<[1], [0], [0], [1], [0, 0, 1, 1], [], []>} : vector<1x512xbf16>, vector<512x256xbf16>, vector<1x256xf32> -> vector<1x256xf32>
    %16 = arith.addf %15, %5 : vector<1x256xf32>
    %cst_14 = arith.constant 0.000000e+00 : f32
    %17 = vector.broadcast %cst_14 : f32 to vector<1x256xf32>
    %18 = arith.maximumf %16, %17 : vector<1x256xf32>
    %19 = arith.truncf %18 : vector<1x256xf32> to vector<1x256xbf16>
    %c0_15 = arith.constant 0 : index
    %c0_16 = arith.constant 0 : index
    %20 = vector.load %arg3[%c0_15, %c0_16] : memref<256x128xbf16, #tpu.memory_space<vmem>>, vector<256x128xbf16>
    %cst_17 = arith.constant dense<0.000000e+00> : vector<1x128xf32>
    %21 = tpu.matmul %19, %20, %cst_17 {dimension_numbers = #tpu.dot_dimension_numbers<[1], [0], [0], [1], [0, 0, 1, 1], [], []>} : vector<1x256xbf16>, vector<256x128xbf16>, vector<1x128xf32> -> vector<1x128xf32>
    %22 = arith.addf %21, %6 : vector<1x128xf32>
    %c0_18 = arith.constant 0 : index
    %c0_19 = arith.constant 0 : index
    %23 = vector.load %arg6[%c0_18, %c0_19] : memref<1x128xf32, #tpu.memory_space<vmem>>, vector<1x128xf32>
    tpu.vector_store %arg6[%c0_18, %c0_19], %22 {strides = array<i32>} : memref<1x128xf32, #tpu.memory_space<vmem>>, vector<1x128xf32>,
    return
  }
}

</mosaic_0001>

<bundles_post_ra>
// kernel: sensor_forward.1
= control target key start
LH: loop header
LB: loop body
LE: loop exit
PB: predicated region body
PF: predicated region fallthrough
CT: control target
= control target key end

     0   :  { %12 = vsyncpa [#allocation3], 0  ;;  %s2534_s0 = inlined_call_operand.vmem [shape: f32[1,512], index: 0, kind: input, shape index: {}]   ;;  %s2535_s1 = inlined_call_operand.hbm [shape: bf16[512,512], index: 1, kind: input, shape index: {}]   ;;  %s2536_s2 = inlined_call_operand.hbm [shape: bf16[512,256], index: 2, kind: input, shape index: {}]   ;;  %s2537_s3 = inlined_call_operand.hbm [shape: bf16[256,128], index: 3, kind: input, shape index: {}]   ;;  %s2538_s4 = inlined_call_operand.vmem [shape: f32[1,896], index: 4, kind: input, shape index: {}]   ;;  %s2539_s5 = inlined_call_operand.vmem [shape: f32[1,512], index: 5, kind: output, shape index: {0}]   ;;  %s2540_s6 = inlined_call_operand.hbm [shape: f32[1,128], index: 6, kind: output, shape index: {1}]  }
   0x1   :  { %13 = vsyncpa [#allocation6], 0 }
   0x2   :  { %14 = vsyncpa [#allocation4], 0  ;;  %s2384_s21 = smov [#allocation5]   ;;  %s2290_s25 = scalar_lea.hbm %s2536_s2, 8192 }
   0x3   :  { %s34_s22 = sshll.u32 %s2384_s21, 4  ;;  %p2291_p0 = scmp.ne.s32.totalorder %s2536_s2, %s2290_s25  ;;  %s35_s22 = int_to_ptr.vmem [resolvable:$true] %s34_s22 }
   0x4   :  { %p2294_p1 = scmp.lt.u32.totalorder %s2290_s25, %s2536_s2 }
   0x6   :  { %p2296_p2 = pnand %p2294_p1, %p2291_p0 }
   0x8   :  { %2299 = shalt.err (!%p2296_p2)
}
   0x9   :  { %s2300_s30 = scalar_lea.vmem %s35_s22, 8192  ;;  %p2305_p4 = scmp.lt.s32.totalorder %s35_s22, %s35_s22 }
   0xa   :  { %p2301_p3 = scmp.ne.s32.totalorder %s35_s22, %s2300_s30  ;;  %p2306_p5 = scmp.lt.s32.totalorder %s2300_s30, %s2300_s30 }
   0xc   :  { %p2307_p6 = por %p2306_p5, %p2305_p4 }
   0xe   :  { %p2308_p7 = pnand %p2307_p6, %p2301_p3 }
  0x10   :  { %2311 = shalt.err (!%p2308_p7)
}
  0x11   :  { %s2385_s7 = smov 128   ;;  %s2386_s8 = smov 8  }
  0x12   :  { %40 = dma.hbm_to_vmem [thread:$0]  %s2536_s2, 8192, %s35_s22, [#allocation6], %s2385_s7, %s2385_s7, %s2386_s8  }
  0x13   :  { %s2387_s11 = smov [#allocation2]   ;;  %s2312_s15 = scalar_lea.hbm %s2535_s1, 16384 }
  0x14   :  { %s22_s12 = sshll.u32 %s2387_s11, 4  ;;  %p2313_p8 = scmp.ne.s32.totalorder %s2535_s1, %s2312_s15  ;;  %s23_s12 = int_to_ptr.vmem [resolvable:$true] %s22_s12 }
  0x15   :  { %p2316_p9 = scmp.lt.u32.totalorder %s2312_s15, %s2535_s1 }
  0x17   :  { %p2318_p10 = pnand %p2316_p9, %p2313_p8 }
  0x19   :  { %2321 = shalt.err (!%p2318_p10)
}
  0x1a   :  { %s2322_s20 = scalar_lea.vmem %s23_s12, 16384  ;;  %p2327_p12 = scmp.lt.s32.totalorder %s23_s12, %s23_s12 }
  0x1b   :  { %p2323_p11 = scmp.ne.s32.totalorder %s23_s12, %s2322_s20  ;;  %p2328_p13 = scmp.lt.s32.totalorder %s2322_s20, %s2322_s20 }
  0x1d   :  { %p2329_p0 = por %p2328_p13, %p2327_p12 }
  0x1f   :  { %p2330_p1 = pnand %p2329_p0, %p2323_p11 }
  0x21   :  { %2333 = shalt.err (!%p2330_p1)
}
  0x22   :  { %s2388_s2 = smov 256   ;;  %s2389_s21 = smov 16  }
  0x23   :  { %28 = dma.hbm_to_vmem [thread:$0]  %s2535_s1, 16384, %s23_s12, [#allocation3], %s2388_s2, %s2388_s2, %s2389_s21  }
  0x24   :  { %s2390_s24 = smov [#allocation7]   ;;  %s2334_s28 = scalar_lea.hbm %s2537_s3, 2048 }
  0x25   :  { %s46_s25 = sshll.u32 %s2390_s24, 4  ;;  %p2335_p2 = scmp.ne.s32.totalorder %s2537_s3, %s2334_s28  ;;  %s47_s25 = int_to_ptr.vmem [resolvable:$true] %s46_s25 }
  0x26   :  { %p2338_p3 = scmp.lt.u32.totalorder %s2334_s28, %s2537_s3 }
  0x28   :  { %p2340_p4 = pnand %p2338_p3, %p2335_p2 }
  0x2a   :  { %2343 = shalt.err (!%p2340_p4)
}
  0x2b   :  { %s2344_s9 = scalar_lea.vmem %s47_s25, 2048  ;;  %p2349_p6 = scmp.lt.s32.totalorder %s47_s25, %s47_s25 }
  0x2c   :  { %p2345_p5 = scmp.ne.s32.totalorder %s47_s25, %s2344_s9  ;;  %p2350_p7 = scmp.lt.s32.totalorder %s2344_s9, %s2344_s9 }
  0x2e   :  { %p2351_p8 = por %p2350_p7, %p2349_p6 }
  0x30   :  { %p2352_p9 = pnand %p2351_p8, %p2345_p5 }
  0x32   :  { %2355 = shalt.err (!%p2352_p9)
}
  0x33   :  { %s2391_s1 = smov 64   ;;  %s2392_s10 = smov 4  }
  0x34   :  { %52 = dma.hbm_to_vmem [thread:$0]  %s2537_s3, 2048, %s47_s25, [#allocation6], %s2391_s1, %s2391_s1, %s2392_s10  }
  0x35   :  { %2378 = dma.done.wait [#allocation3], 16384  }
  0x36   :  { %2379 = vsyncadd [#allocation3], 4294950912 }
  0x37   :  { %2380 = dma.done.wait [#allocation6], 10240  }
  0x38   :  { %2381 = vsyncadd [#allocation6], 4294957056  ;;  %v1987_v0 = vld [vmem:[#allocation2 + $0x4] ss:$16 sps:$4 sm:$0xff]   ;;  %v1989_v1 = vld [vmem:[#allocation2] ss:$16 sps:$4 sm:$0xff]   ;;  %v67_v35 = vlaneseq }
  0x39   :  { %889 = vmatprep.subr.bf16.mxu1 %v1987_v0  ;;  %v1990_v2 = vld [vmem:[#allocation2 + $0x204] ss:$16 sps:$4 sm:$0xff]   ;;  %v1992_v3 = vld [vmem:[#allocation2 + $0x200] ss:$16 sps:$4 sm:$0xff]   ;;  %s2393_s20 = smov [#allocation8]  }
  0x3a   :  { %890 = vmatpush1.bf16.msra.mxu1 %v1989_v1  ;;  %v1993_v4 = vld [vmem:[#allocation2 + $0x24] ss:$16 sps:$4 sm:$0xff]   ;;  %v1995_v5 = vld [vmem:[#allocation2 + $0x20] ss:$16 sps:$4 sm:$0xff]   ;;  %930 = vmatprep.subr.bf16.mxu0 %v1990_v2  ;;  %v2465_v40 = vshrl.u32 %v67_v35, 7  ;;  %vm69_vm0 = vcmp.lt.s32.totalorder %v67_v35, 512 }
  0x3b   :  { %v1996_v6 = vld [vmem:[#allocation2 + $0x224] ss:$16 sps:$4 sm:$0xff]   ;;  %931 = vmatpush1.bf16.msra.mxu0 %v1992_v3  ;;  %891 = vmatprep.subr.bf16.mxu1 %v1993_v4  ;;  %v1998_v7 = vld [vmem:[#allocation2 + $0x220] ss:$16 sps:$4 sm:$0xff]   ;;  %v2105_v35 = vld [vmem:[#allocation2 + $0xec] ss:$16 sps:$4 sm:$0xff]  }
  0x3c   :  { %932 = vmatprep.subr.bf16.mxu0 %v1996_v6  ;;  %v1999_v8 = vld [vmem:[#allocation2 + $0x44] ss:$16 sps:$4 sm:$0xff]   ;;  %v2001_v9 = vld [vmem:[#allocation2 + $0x40] ss:$16 sps:$4 sm:$0xff]   ;;  %v2468_v45 = vsub.s32 1, %v2465_v40  ;;  %v90_v46 = vsub.s32 3, %v2465_v40 }
  0x3d   :  { %v2002_v10 = vld [vmem:[#allocation2 + $0x244] ss:$16 sps:$4 sm:$0xff]   ;;  %v2004_v12 = vld [vmem:[#allocation2 + $0x240] ss:$16 sps:$4 sm:$0xff]   ;;  %v2484_v4 = vsub.s32 0, %v2465_v40  ;;  %s1719_s2 = sshll.u32 %s2393_s20, 4  ;;  %s1720_s2 = int_to_ptr.vmem [resolvable:$true] %s1719_s2 }
  0x3e   :  { %892 = vmatpush1.bf16.msra.mxu1 %v1995_v5  ;;  %v2005_v11 = vld [vmem:[#allocation2 + $0x64] ss:$16 sps:$4 sm:$0xff]   ;;  %v2007_v14 = vld [vmem:[#allocation2 + $0x60] ss:$16 sps:$4 sm:$0xff]   ;;  %s2356_s21 = scalar_lea.vmem %s1720_s2, 16  ;;  %s2360_s22 = scalar_lea.vmem %s1720_s2, 32 }
  0x3f   :  { %893 = vmatprep.subr.bf16.mxu1 %v1999_v8  ;;  %933 = vmatpush1.bf16.msra.mxu0 %v1998_v7  ;;  %v2008_v13 = vld [vmem:[#allocation2 + $0x264] ss:$16 sps:$4 sm:$0xff]   ;;  %v2010_v16 = vld [vmem:[#allocation2 + $0x260] ss:$16 sps:$4 sm:$0xff]   ;;  %v86_v8 = vsub.s32 2, %v2465_v40  ;;  %v2289_v40 = vld [vmem:[#allocation7 + $0x38] sm:$0xff]   ;;  %p2357_p10 = scmp.ne.s32.totalorder %s1720_s2, %s2356_s21  ;;  %p2361_p11 = scmp.lt.s32.totalorder %s1720_s2, %s1720_s2 }
  0x40   :  { %934 = vmatprep.subr.bf16.mxu0 %v2002_v10  ;;  %v2011_v15 = vld [vmem:[#allocation2 + $0x84] ss:$16 sps:$4 sm:$0xff]   ;;  %v2013_v18 = vld [vmem:[#allocation2 + $0x80] ss:$16 sps:$4 sm:$0xff]   ;;  %p2362_p12 = scmp.lt.s32.totalorder %s2360_s22, %s2356_s21 }
  0x41   :  { %v2014_v17 = vld [vmem:[#allocation2 + $0x284] ss:$16 sps:$4 sm:$0xff]   ;;  %v2016_v20 = vld [vmem:[#allocation2 + $0x280] ss:$16 sps:$4 sm:$0xff]  }
  0x42   :  { %894 = vmatpush1.bf16.msra.mxu1 %v2001_v9  ;;  %v2017_v19 = vld [vmem:[#allocation2 + $0xa4] ss:$16 sps:$4 sm:$0xff]   ;;  %v2019_v22 = vld [vmem:[#allocation2 + $0xa0] ss:$16 sps:$4 sm:$0xff]   ;;  %p2363_p13 = por %p2362_p12, %p2361_p11 }
  0x43   :  { %895 = vmatprep.subr.bf16.mxu1 %v2005_v11  ;;  %935 = vmatpush1.bf16.msra.mxu0 %v2004_v12  ;;  %v2020_v21 = vld [vmem:[#allocation2 + $0x2a4] ss:$16 sps:$4 sm:$0xff]   ;;  %v2022_v24 = vld [vmem:[#allocation2 + $0x2a0] ss:$16 sps:$4 sm:$0xff]  }
  0x44   :  { %936 = vmatprep.subr.bf16.mxu0 %v2008_v13  ;;  %v2023_v23 = vld [vmem:[#allocation2 + $0xc4] ss:$16 sps:$4 sm:$0xff]   ;;  %v2025_v26 = vld [vmem:[#allocation2 + $0xc0] ss:$16 sps:$4 sm:$0xff]   ;;  %p2364_p0 = pnand %p2363_p13, %p2357_p10 }
  0x45   :  { %v2026_v25 = vld [vmem:[#allocation2 + $0x2c4] ss:$16 sps:$4 sm:$0xff]   ;;  %v2028_v28 = vld [vmem:[#allocation2 + $0x2c0] ss:$16 sps:$4 sm:$0xff]  }
  0x46   :  { %896 = vmatpush1.bf16.msra.mxu1 %v2007_v14  ;;  %v2029_v27 = vld [vmem:[#allocation2 + $0xe4] ss:$16 sps:$4 sm:$0xff]   ;;  %v2031_v30 = vld [vmem:[#allocation2 + $0xe0] ss:$16 sps:$4 sm:$0xff]   ;;  %v2084_v14 = vld [vmem:[#allocation2 + $0xc] ss:$16 sps:$4 sm:$0xff]  }
  0x47   :  { %897 = vmatprep.subr.bf16.mxu1 %v2011_v15  ;;  %937 = vmatpush1.bf16.msra.mxu0 %v2010_v16  ;;  %v2032_v29 = vld [vmem:[#allocation2 + $0x2e4] ss:$16 sps:$4 sm:$0xff]   ;;  %v2034_v32 = vld [vmem:[#allocation2 + $0x2e0] ss:$16 sps:$4 sm:$0xff]  }
  0x48   :  { %938 = vmatprep.subr.bf16.mxu0 %v2014_v17  ;;  %v2035_v31 = vld [vmem:[#allocation2 + $0x104] ss:$16 sps:$4 sm:$0xff]   ;;  %v2037_v34 = vld [vmem:[#allocation2 + $0x100] ss:$16 sps:$4 sm:$0xff]  }
  0x49   :  { %v2038_v33 = vld [vmem:[#allocation2 + $0x304] ss:$16 sps:$4 sm:$0xff]   ;;  %v2040_v37 = vld [vmem:[#allocation2 + $0x300] ss:$16 sps:$4 sm:$0xff]  }
  0x4a   :  { %898 = vmatpush1.bf16.msra.mxu1 %v2013_v18  ;;  %v2041_v36 = vld [vmem:[#allocation2 + $0x124] ss:$16 sps:$4 sm:$0xff]   ;;  %v2043_v39 = vld [vmem:[#allocation2 + $0x120] ss:$16 sps:$4 sm:$0xff]   ;;  %v2082_v18 = vld [vmem:[#allocation2 + $0x8] ss:$16 sps:$4 sm:$0xff]  }
  0x4b   :  { %899 = vmatprep.subr.bf16.mxu1 %v2017_v19  ;;  %939 = vmatpush1.bf16.msra.mxu0 %v2016_v20  ;;  %v2044_v38 = vld [vmem:[#allocation2 + $0x324] ss:$16 sps:$4 sm:$0xff]   ;;  %v2046_v42 = vld [vmem:[#allocation2 + $0x320] ss:$16 sps:$4 sm:$0xff]   ;;  %v2087_v20 = vld [vmem:[#allocation2 + $0x2c] ss:$16 sps:$4 sm:$0xff]  }
  0x4c   :  { %940 = vmatprep.subr.bf16.mxu0 %v2020_v21  ;;  %v2047_v41 = vld [vmem:[#allocation2 + $0x144] ss:$16 sps:$4 sm:$0xff]   ;;  %v2049_v44 = vld [vmem:[#allocation2 + $0x140] ss:$16 sps:$4 sm:$0xff]   ;;  %v2085_v21 = vld [vmem:[#allocation2 + $0x28] ss:$16 sps:$4 sm:$0xff]  }
  0x4d   :  { %v2050_v43 = vld [vmem:[#allocation2 + $0x344] ss:$16 sps:$4 sm:$0xff]   ;;  %v2052_v48 = vld [vmem:[#allocation2 + $0x340] ss:$16 sps:$4 sm:$0xff]  }
  0x4e   :  { %900 = vmatpush1.bf16.msra.mxu1 %v2019_v22  ;;  %v2053_v47 = vld [vmem:[#allocation2 + $0x164] ss:$16 sps:$4 sm:$0xff]   ;;  %v65_v50 = vld [vmem:[%s2534_s0] sm:$0xf]  ;;  %v2090_v22 = vld [vmem:[#allocation2 + $0x4c] ss:$16 sps:$4 sm:$0xff]  }
  0x4f   :  { %901 = vmatprep.subr.bf16.mxu1 %v2023_v23  ;;  %941 = vmatpush1.bf16.msra.mxu0 %v2022_v24  ;;  %v2056_v49 = vld [vmem:[#allocation2 + $0x364] ss:$16 sps:$4 sm:$0xff]   ;;  %v2055_v51 = vld [vmem:[#allocation2 + $0x160] ss:$16 sps:$4 sm:$0xff]   ;;  %v66_v52 = vsub.f32 1.0, %v65_v50  ;;  %v83_v53 = vrot.slane %v65_v50, %v2468_v45  ;;  %v91_v54 = vrot.slane %v65_v50, %v90_v46  ;;  %v79_v12 = vrot.slane %v65_v50, %v2484_v4 }
  0x50   :  { %942 = vmatprep.subr.bf16.mxu0 %v2026_v25  ;;  %v2059_v55 = vld [vmem:[#allocation2 + $0x184] ss:$16 sps:$4 sm:$0xff]   ;;  %v2058_v56 = vld [vmem:[#allocation2 + $0x360] ss:$16 sps:$4 sm:$0xff]   ;;  %v87_v15 = vrot.slane %v65_v50, %v86_v8  ;;  %v2088_v23 = vld [vmem:[#allocation2 + $0x48] ss:$16 sps:$4 sm:$0xff]  }
  0x51   :  { %71 = vst.msk [vmem:[%s2539_s5] sm:$0xf] %vm69_vm0, %v66_v52  ;;  %v97_v57 = vpack.c.bf16 %v83_v53, %v83_v53  ;;  %v2480_v58 = vpack.c.bf16 %v91_v54, %v91_v54  ;;  %v2062_v59 = vld [vmem:[#allocation2 + $0x384] ss:$16 sps:$4 sm:$0xff]   ;;  %v2061_v60 = vld [vmem:[#allocation2 + $0x180] ss:$16 sps:$4 sm:$0xff]   ;;  %v2490_v17 = vpack.c.bf16 %v79_v12, %v79_v12 }
  0x52   :  { %902 = vmatpush1.bf16.msra.mxu1 %v2025_v26  ;;  %v2065_v61 = vld [vmem:[#allocation2 + $0x1a4] ss:$16 sps:$4 sm:$0xff]   ;;  %v2064_v62 = vld [vmem:[#allocation2 + $0x380] ss:$16 sps:$4 sm:$0xff]   ;;  %v2492_v19 = vpack.c.bf16 %v87_v15, %v87_v15  ;;  %v2093_v24 = vld [vmem:[#allocation2 + $0x6c] ss:$16 sps:$4 sm:$0xff]  }
  0x53   :  { %903 = vmatprep.subr.bf16.mxu1 %v2029_v27  ;;  %943 = vmatpush1.bf16.msra.mxu0 %v2028_v28  ;;  %v2068_v63 = vld [vmem:[#allocation2 + $0x3a4] ss:$16 sps:$4 sm:$0xff]   ;;  %v2067_v0 = vld [vmem:[#allocation2 + $0x1a0] ss:$16 sps:$4 sm:$0xff]   ;;  %v2091_v25 = vld [vmem:[#allocation2 + $0x68] ss:$16 sps:$4 sm:$0xff]  }
  0x54   :  { %944 = vmatprep.subr.bf16.mxu0 %v2032_v29  ;;  %921 = vmatprep.mubr.bf16.mxu1 %v97_v57  ;;  %v2071_v1 = vld [vmem:[#allocation2 + $0x1c4] ss:$16 sps:$4 sm:$0xff]   ;;  %v2070_v2 = vld [vmem:[#allocation2 + $0x3a0] ss:$16 sps:$4 sm:$0xff]   ;;  %v2096_v26 = vld [vmem:[#allocation2 + $0x8c] ss:$16 sps:$4 sm:$0xff]  }
  0x55   :  { %962 = vmatprep.mubr.bf16.mxu0 %v2480_v58  ;;  %v2074_v3 = vld [vmem:[#allocation2 + $0x3c4] ss:$16 sps:$4 sm:$0xff]   ;;  %v2073_v5 = vld [vmem:[#allocation2 + $0x1c0] ss:$16 sps:$4 sm:$0xff]   ;;  %v2094_v27 = vld [vmem:[#allocation2 + $0x88] ss:$16 sps:$4 sm:$0xff]  }
  0x56   :  { %904 = vmatpush1.bf16.msra.mxu1 %v2031_v30  ;;  %v2076_v6 = vld [vmem:[#allocation2 + $0x3c0] ss:$16 sps:$4 sm:$0xff]   ;;  %v2077_v7 = vld [vmem:[#allocation2 + $0x1e4] ss:$16 sps:$4 sm:$0xff]   ;;  %v2099_v28 = vld [vmem:[#allocation2 + $0xac] ss:$16 sps:$4 sm:$0xff]  }
  0x57   :  { %905 = vmatprep.subr.bf16.mxu1 %v2035_v31  ;;  %945 = vmatpush1.bf16.msra.mxu0 %v2034_v32  ;;  %v224_v9 = vld [vmem:[#allocation2 + $0x3e0] sm:$0xff]  ;;  %v226_v10 = vld [vmem:[#allocation2 + $0x3f0] sm:$0xff]  ;;  %v2097_v29 = vld [vmem:[#allocation2 + $0xa8] ss:$16 sps:$4 sm:$0xff]  }
  0x58   :  { %946 = vmatprep.subr.bf16.mxu0 %v2038_v33  ;;  %v2080_v11 = vld [vmem:[#allocation2 + $0x3e4] ss:$16 sps:$4 sm:$0xff]   ;;  %v2079_v13 = vld [vmem:[#allocation2 + $0x1e0] ss:$16 sps:$4 sm:$0xff]   ;;  %v1855_v16 = vcombine.low %v224_v9, %v226_v10  ;;  %v2102_v30 = vld [vmem:[#allocation2 + $0xcc] ss:$16 sps:$4 sm:$0xff]  }
  0x59   :  { %v2178_v31 = vld [vmem:[#allocation5] ss:$8 sps:$4 sm:$0xff]   ;;  %v2180_v32 = vld [vmem:[#allocation5 + $0x4] ss:$8 sps:$4 sm:$0xff]   ;;  %v2195_v53 = vld [vmem:[#allocation5 + $0x54] ss:$8 sps:$4 sm:$0xff]  }
  0x5a   :  { %906 = vmatpush1.bf16.msra.mxu1 %v2037_v34  ;;  %v2100_v33 = vld [vmem:[#allocation2 + $0xc8] ss:$16 sps:$4 sm:$0xff]   ;;  %v2183_v34 = vld [vmem:[#allocation5 + $0x14] ss:$8 sps:$4 sm:$0xff]  }
  0x5b   :  { %907 = vmatprep.subr.bf16.mxu1 %v2041_v36  ;;  %947 = vmatpush1.bf16.msra.mxu0 %v2040_v37  ;;  %v2181_v36 = vld [vmem:[#allocation5 + $0x10] ss:$8 sps:$4 sm:$0xff]   ;;  %v2186_v37 = vld [vmem:[#allocation5 + $0x24] ss:$8 sps:$4 sm:$0xff]   ;;  %v2213_v15 = vld [vmem:[#allocation5 + $0xb4] ss:$8 sps:$4 sm:$0xff]  }
  0x5c   :  { %948 = vmatprep.subr.bf16.mxu0 %v2044_v38  ;;  %v2103_v38 = vld [vmem:[#allocation2 + $0xe8] ss:$16 sps:$4 sm:$0xff]   ;;  %v2114_v50 = vld [vmem:[#allocation2 + $0x14c] ss:$16 sps:$4 sm:$0xff]  }
  0x5d   :  { %v2112_v52 = vld [vmem:[#allocation2 + $0x148] ss:$16 sps:$4 sm:$0xff]   ;;  %v2117_v54 = vld [vmem:[#allocation2 + $0x16c] ss:$16 sps:$4 sm:$0xff]  }
  0x5e   :  { %908 = vmatpush1.bf16.msra.mxu1 %v2043_v39  ;;  %v2108_v39 = vld [vmem:[#allocation2 + $0x10c] ss:$16 sps:$4 sm:$0xff]   ;;  %v2205_v10 = vld [vmem:[#allocation5 + $0x90] ss:$8 sps:$4 sm:$0xff]  }
  0x5f   :  { %909 = vmatprep.subr.bf16.mxu1 %v2047_v41  ;;  %949 = vmatpush1.bf16.msra.mxu0 %v2046_v42  ;;  %v2184_v41 = vld [vmem:[#allocation5 + $0x20] ss:$8 sps:$4 sm:$0xff]   ;;  %v2189_v42 = vld [vmem:[#allocation5 + $0x34] ss:$8 sps:$4 sm:$0xff]  }
  0x60   :  { %950 = vmatprep.subr.bf16.mxu0 %v2050_v43  ;;  %v2106_v43 = vld [vmem:[#allocation2 + $0x108] ss:$16 sps:$4 sm:$0xff]   ;;  %v2129_v9 = vld [vmem:[#allocation2 + $0x1ec] ss:$16 sps:$4 sm:$0xff]  }
  0x61   :  { %v2127_v12 = vld [vmem:[#allocation2 + $0x1e8] ss:$16 sps:$4 sm:$0xff]  }
  0x62   :  { %910 = vmatpush1.bf16.msra.mxu1 %v2049_v44  ;;  %v2111_v44 = vld [vmem:[#allocation2 + $0x12c] ss:$16 sps:$4 sm:$0xff]  }
  0x63   :  { %911 = vmatprep.subr.bf16.mxu1 %v2053_v47  ;;  %951 = vmatpush1.bf16.msra.mxu0 %v2052_v48  ;;  %v2187_v47 = vld [vmem:[#allocation5 + $0x30] ss:$8 sps:$4 sm:$0xff]   ;;  %v2192_v48 = vld [vmem:[#allocation5 + $0x44] ss:$8 sps:$4 sm:$0xff]  }
  0x64   :  { %952 = vmatprep.subr.bf16.mxu0 %v2056_v49  ;;  %v2109_v49 = vld [vmem:[#allocation2 + $0x128] ss:$16 sps:$4 sm:$0xff]  }
  0x66   :  { %912 = vmatpush1.bf16.msra.mxu1 %v2055_v51  ;;  %v2190_v51 = vld [vmem:[#allocation5 + $0x40] ss:$8 sps:$4 sm:$0xff]  }
  0x67   :  { %913 = vmatprep.subr.bf16.mxu1 %v2059_v55  ;;  %953 = vmatpush1.bf16.msra.mxu0 %v2058_v56  ;;  %v2193_v55 = vld [vmem:[#allocation5 + $0x50] ss:$8 sps:$4 sm:$0xff]   ;;  %v2198_v56 = vld [vmem:[#allocation5 + $0x64] ss:$8 sps:$4 sm:$0xff]  }
  0x68   :  { %954 = vmatprep.subr.bf16.mxu0 %v2062_v59  ;;  %v2120_v59 = vld [vmem:[#allocation2 + $0x18c] ss:$16 sps:$4 sm:$0xff]  }
  0x6a   :  { %914 = vmatpush1.bf16.msra.mxu1 %v2061_v60  ;;  %v2196_v60 = vld [vmem:[#allocation5 + $0x60] ss:$8 sps:$4 sm:$0xff]  }
  0x6b   :  { %915 = vmatprep.subr.bf16.mxu1 %v2065_v61  ;;  %955 = vmatpush1.bf16.msra.mxu0 %v2064_v62  ;;  %v2201_v61 = vld [vmem:[#allocation5 + $0x74] ss:$8 sps:$4 sm:$0xff]   ;;  %v2118_v62 = vld [vmem:[#allocation2 + $0x188] ss:$16 sps:$4 sm:$0xff]  }
  0x6c   :  { %956 = vmatprep.subr.bf16.mxu0 %v2068_v63  ;;  %v2123_v63 = vld [vmem:[#allocation2 + $0x1ac] ss:$16 sps:$4 sm:$0xff]  }
  0x6e   :  { %916 = vmatpush1.bf16.msra.mxu1 %v2067_v0  ;;  %v2199_v0 = vld [vmem:[#allocation5 + $0x70] ss:$8 sps:$4 sm:$0xff]  }
  0x6f   :  { %917 = vmatprep.subr.bf16.mxu1 %v2071_v1  ;;  %957 = vmatpush1.bf16.msra.mxu0 %v2070_v2  ;;  %v2204_v1 = vld [vmem:[#allocation5 + $0x84] ss:$8 sps:$4 sm:$0xff]   ;;  %v2121_v2 = vld [vmem:[#allocation2 + $0x1a8] ss:$16 sps:$4 sm:$0xff]  }
  0x70   :  { %958 = vmatprep.subr.bf16.mxu0 %v2074_v3  ;;  %v2126_v3 = vld [vmem:[#allocation2 + $0x1cc] ss:$16 sps:$4 sm:$0xff]  }
  0x72   :  { %918 = vmatpush1.bf16.msra.mxu1 %v2073_v5  ;;  %v2202_v5 = vld [vmem:[#allocation5 + $0x80] ss:$8 sps:$4 sm:$0xff]  }
  0x73   :  { %919 = vmatprep.subr.bf16.mxu1 %v2077_v7  ;;  %959 = vmatpush1.bf16.msra.mxu0 %v2076_v6  ;;  %v2207_v6 = vld [vmem:[#allocation5 + $0x94] ss:$8 sps:$4 sm:$0xff]   ;;  %v2124_v7 = vld [vmem:[#allocation2 + $0x1c8] ss:$16 sps:$4 sm:$0xff]  }
  0x74   :  { %960 = vmatprep.subr.bf16.mxu0 %v2080_v11  ;;  %v2210_v11 = vld [vmem:[#allocation5 + $0xa4] ss:$8 sps:$4 sm:$0xff]  }
  0x76   :  { %920 = vmatpush1.bf16.msra.mxu1 %v2079_v13  ;;  %v2132_v13 = vld [vmem:[#allocation2 + $0x20c] ss:$16 sps:$4 sm:$0xff]  }
  0x77   :  { %971 = vmatprep.subr.bf16.mxu1 %v2084_v14  ;;  %961 = vmatpush1.bf16.msra.mxu0 %v1855_v16  ;;  %v2208_v14 = vld [vmem:[#allocation5 + $0xa0] ss:$8 sps:$4 sm:$0xff]  }
  0x78   :  { %1456 = vmatprep.subr.bf16.mxu0 %v2180_v32  ;;  %v2130_v16 = vld [vmem:[#allocation2 + $0x208] ss:$16 sps:$4 sm:$0xff]   ;;  %v2150_v32 = vld [vmem:[#allocation2 + $0x2cc] ss:$16 sps:$4 sm:$0xff]  }
  0x79   :  { %922 = vmatmul.mubr.bf16.vlgmr.msra.gmra.mrb[0].mxu1 %v2490_v17 }
  0x7a   :  { %972 = vmatpush1.bf16.msra.mxu1 %v2082_v18  ;;  %1003 = vmatprep.mubr.bf16.mxu1 %v97_v57  ;;  %v2115_v57 = vld [vmem:[#allocation2 + $0x168] ss:$16 sps:$4 sm:$0xff]   ;;  %v2135_v18 = vld [vmem:[#allocation2 + $0x22c] ss:$16 sps:$4 sm:$0xff]  }
  0x7b   :  { %963 = vmatmul.mubr.bf16.vlgmr.msra.gmra.mrb[0].mxu0 %v2492_v19  ;;  %973 = vmatprep.subr.bf16.mxu1 %v2087_v20  ;;  %v2211_v20 = vld [vmem:[#allocation5 + $0xb0] ss:$8 sps:$4 sm:$0xff]  }
  0x7c   :  { %1457 = vmatpush1.bf16.msra.mxu0 %v2178_v31  ;;  %v2145_v31 = vld [vmem:[#allocation2 + $0x2a8] ss:$16 sps:$4 sm:$0xff]  }
  0x7d   :  { %1458 = vmatprep.subr.bf16.mxu0 %v2183_v34  ;;  %v2148_v34 = vld [vmem:[#allocation2 + $0x2c8] ss:$16 sps:$4 sm:$0xff]  }
  0x7e   :  { %974 = vmatpush1.bf16.msra.mxu1 %v2085_v21  ;;  %v2216_v21 = vld [vmem:[#allocation5 + $0xc4] ss:$8 sps:$4 sm:$0xff]  }
  0x7f   :  { %975 = vmatprep.subr.bf16.mxu1 %v2090_v22  ;;  %v2133_v22 = vld [vmem:[#allocation2 + $0x228] ss:$16 sps:$4 sm:$0xff]  }
  0x80   :  { %1459 = vmatpush1.bf16.msra.mxu0 %v2181_v36  ;;  %v2153_v36 = vld [vmem:[#allocation2 + $0x2ec] ss:$16 sps:$4 sm:$0xff]  }
  0x81   :  { %1460 = vmatprep.subr.bf16.mxu0 %v2186_v37  ;;  %v2225_v37 = vld [vmem:[#allocation5 + $0xf4] ss:$8 sps:$4 sm:$0xff]  }
  0x82   :  { %976 = vmatpush1.bf16.msra.mxu1 %v2088_v23  ;;  %v2138_v23 = vld [vmem:[#allocation2 + $0x24c] ss:$16 sps:$4 sm:$0xff]  }
  0x83   :  { %977 = vmatprep.subr.bf16.mxu1 %v2093_v24  ;;  %v2214_v24 = vld [vmem:[#allocation5 + $0xc0] ss:$8 sps:$4 sm:$0xff]  }
  0x84   :  { %1461 = vmatpush1.bf16.msra.mxu0 %v2184_v41  ;;  %v2156_v41 = vld [vmem:[#allocation2 + $0x30c] ss:$16 sps:$4 sm:$0xff]  }
  0x85   :  { %1462 = vmatprep.subr.bf16.mxu0 %v2189_v42  ;;  %v2154_v42 = vld [vmem:[#allocation2 + $0x308] ss:$16 sps:$4 sm:$0xff]  }
  0x86   :  { %978 = vmatpush1.bf16.msra.mxu1 %v2091_v25  ;;  %v2219_v25 = vld [vmem:[#allocation5 + $0xd4] ss:$8 sps:$4 sm:$0xff]  }
  0x87   :  { %979 = vmatprep.subr.bf16.mxu1 %v2096_v26  ;;  %v2136_v26 = vld [vmem:[#allocation2 + $0x248] ss:$16 sps:$4 sm:$0xff]  }
  0x88   :  { %1463 = vmatpush1.bf16.msra.mxu0 %v2187_v47  ;;  %v2157_v47 = vld [vmem:[#allocation2 + $0x328] ss:$16 sps:$4 sm:$0xff]  }
  0x89   :  { %1464 = vmatprep.subr.bf16.mxu0 %v2192_v48  ;;  %v2162_v48 = vld [vmem:[#allocation2 + $0x34c] ss:$16 sps:$4 sm:$0xff]  }
  0x8a   :  { %980 = vmatpush1.bf16.msra.mxu1 %v2094_v27  ;;  %v2141_v27 = vld [vmem:[#allocation2 + $0x26c] ss:$16 sps:$4 sm:$0xff]  }
  0x8b   :  { %981 = vmatprep.subr.bf16.mxu1 %v2099_v28  ;;  %v2217_v28 = vld [vmem:[#allocation5 + $0xd0] ss:$8 sps:$4 sm:$0xff]  }
  0x8c   :  { %1465 = vmatpush1.bf16.msra.mxu0 %v2190_v51  ;;  %v2163_v51 = vld [vmem:[#allocation2 + $0x368] ss:$16 sps:$4 sm:$0xff]  }
  0x8d   :  { %1466 = vmatprep.subr.bf16.mxu0 %v2195_v53  ;;  %v2166_v53 = vld [vmem:[#allocation2 + $0x388] ss:$16 sps:$4 sm:$0xff]  }
  0x8e   :  { %982 = vmatpush1.bf16.msra.mxu1 %v2097_v29  ;;  %v2144_v29 = vld [vmem:[#allocation2 + $0x28c] ss:$16 sps:$4 sm:$0xff]  }
  0x8f   :  { %983 = vmatprep.subr.bf16.mxu1 %v2102_v30  ;;  %v2147_v30 = vld [vmem:[#allocation2 + $0x2ac] ss:$16 sps:$4 sm:$0xff]  }
  0x90   :  { %1467 = vmatpush1.bf16.msra.mxu0 %v2193_v55  ;;  %v2169_v55 = vld [vmem:[#allocation2 + $0x3a8] ss:$16 sps:$4 sm:$0xff]  }
  0x91   :  { %1468 = vmatprep.subr.bf16.mxu0 %v2198_v56  ;;  %v2174_v56 = vld [vmem:[#allocation2 + $0x3cc] ss:$16 sps:$4 sm:$0xff]  }
  0x92   :  { %984 = vmatpush1.bf16.msra.mxu1 %v2100_v33  ;;  %v2222_v33 = vld [vmem:[#allocation5 + $0xe4] ss:$8 sps:$4 sm:$0xff]  }
  0x93   :  { %985 = vmatprep.subr.bf16.mxu1 %v2105_v35  ;;  %v2220_v35 = vld [vmem:[#allocation5 + $0xe0] ss:$8 sps:$4 sm:$0xff]  }
  0x94   :  { %1469 = vmatpush1.bf16.msra.mxu0 %v2196_v60  ;;  %v2175_v60 = vld [vmem:[#allocation2 + $0x3e8] ss:$16 sps:$4 sm:$0xff]  }
  0x95   :  { %1470 = vmatprep.subr.bf16.mxu0 %v2201_v61  ;;  %v2502_v61 = vld [vmem:[%s2538_s4] sm:$0xf] }
  0x96   :  { %986 = vmatpush1.bf16.msra.mxu1 %v2103_v38  ;;  %v2151_v38 = vld [vmem:[#allocation2 + $0x2e8] ss:$16 sps:$4 sm:$0xff]  }
  0x97   :  { %987 = vmatprep.subr.bf16.mxu1 %v2108_v39  ;;  %v2223_v39 = vld [vmem:[#allocation5 + $0xf0] ss:$8 sps:$4 sm:$0xff]  }
  0x98   :  { %1471 = vmatpush1.bf16.msra.mxu0 %v2199_v0 }
  0x99   :  { %1472 = vmatprep.subr.bf16.mxu0 %v2204_v1 }
  0x9a   :  { %988 = vmatpush1.bf16.msra.mxu1 %v2106_v43  ;;  %v2159_v43 = vld [vmem:[#allocation2 + $0x32c] ss:$16 sps:$4 sm:$0xff]  }
  0x9b   :  { %989 = vmatprep.subr.bf16.mxu1 %v2111_v44  ;;  %v2228_v44 = vld [vmem:[#allocation5 + $0x104] ss:$8 sps:$4 sm:$0xff]  }
  0x9c   :  { %1473 = vmatpush1.bf16.msra.mxu0 %v2202_v5 }
  0x9d   :  { %1474 = vmatprep.subr.bf16.mxu0 %v2207_v6 }
  0x9e   :  { %990 = vmatpush1.bf16.msra.mxu1 %v2109_v49  ;;  %v2160_v49 = vld [vmem:[#allocation2 + $0x348] ss:$16 sps:$4 sm:$0xff]  }
  0x9f   :  { %991 = vmatprep.subr.bf16.mxu1 %v2114_v50  ;;  %v2165_v50 = vld [vmem:[#allocation2 + $0x36c] ss:$16 sps:$4 sm:$0xff]  }
  0xa0   :  { %1475 = vmatpush1.bf16.msra.mxu0 %v2205_v10 }
  0xa1   :  { %1476 = vmatprep.subr.bf16.mxu0 %v2210_v11 }
  0xa2   :  { %992 = vmatpush1.bf16.msra.mxu1 %v2112_v52  ;;  %v2168_v52 = vld [vmem:[#allocation2 + $0x38c] ss:$16 sps:$4 sm:$0xff]  }
  0xa3   :  { %993 = vmatprep.subr.bf16.mxu1 %v2117_v54  ;;  %v2171_v54 = vld [vmem:[#allocation2 + $0x3ac] ss:$16 sps:$4 sm:$0xff]  }
  0xa4   :  { %1477 = vmatpush1.bf16.msra.mxu0 %v2208_v14 }
  0xa5   :  { %1478 = vmatprep.subr.bf16.mxu0 %v2213_v15 }
  0xa6   :  { %994 = vmatpush1.bf16.msra.mxu1 %v2115_v57  ;;  %v2172_v57 = vld [vmem:[#allocation2 + $0x3c8] ss:$16 sps:$4 sm:$0xff]  }
  0xa7   :  { %995 = vmatprep.subr.bf16.mxu1 %v2120_v59  ;;  %v2177_v59 = vld [vmem:[#allocation2 + $0x3ec] ss:$16 sps:$4 sm:$0xff]  }
  0xa8   :  { %1479 = vmatpush1.bf16.msra.mxu0 %v2211_v20  ;;  %v2231_v20 = vld [vmem:[#allocation5 + $0x114] ss:$8 sps:$4 sm:$0xff]  }
  0xa9   :  { %1480 = vmatprep.subr.bf16.mxu0 %v2216_v21  ;;  %v2274_v21 = vld [vmem:[#allocation7 + $0x40] sm:$0xff]  }
  0xaa   :  { %996 = vmatpush1.bf16.msra.mxu1 %v2118_v62  ;;  %v872_v62 = vrot.slane %v2502_v61, %v2484_v4 }
  0xab   :  { %997 = vmatprep.subr.bf16.mxu1 %v2123_v63  ;;  %v876_v63 = vrot.slane %v2502_v61, %v2468_v45 }
  0xac   :  { %1481 = vmatpush1.bf16.msra.mxu0 %v2214_v24  ;;  %v2229_v24 = vld [vmem:[#allocation5 + $0x110] ss:$8 sps:$4 sm:$0xff]  }
  0xad   :  { %1482 = vmatprep.subr.bf16.mxu0 %v2219_v25  ;;  %v2277_v25 = vld [vmem:[#allocation7 + $0x8] sm:$0xff]  }
  0xae   :  { %998 = vmatpush1.bf16.msra.mxu1 %v2121_v2 }
  0xaf   :  { %999 = vmatprep.subr.bf16.mxu1 %v2126_v3 }
  0xb0   :  { %1483 = vmatpush1.bf16.msra.mxu0 %v2217_v28  ;;  %v2232_v28 = vld [vmem:[#allocation5 + $0x120] ss:$8 sps:$4 sm:$0xff]  }
  0xb1   :  { %1484 = vmatprep.subr.bf16.mxu0 %v2222_v33  ;;  %v2282_v33 = vld [vmem:[#allocation7 + $0x60] sm:$0xff]  }
  0xb2   :  { %1000 = vmatpush1.bf16.msra.mxu1 %v2124_v7 }
  0xb3   :  { %1001 = vmatprep.subr.bf16.mxu1 %v2129_v9 }
  0xb4   :  { %1485 = vmatpush1.bf16.msra.mxu0 %v2220_v35  ;;  %v2283_v35 = vld [vmem:[#allocation7 + $0x20] sm:$0xff]  }
  0xb5   :  { %1486 = vmatprep.subr.bf16.mxu0 %v2225_v37  ;;  %v2284_v37 = vld [vmem:[#allocation7 + $0x68] sm:$0xff]  }
  0xb6   :  { %1002 = vmatpush1.bf16.msra.mxu1 %v2127_v12 }
  0xb7   :  { %1012 = vmatprep.subr.bf16.mxu1 %v2132_v13 }
  0xb8   :  { %1487 = vmatpush1.bf16.msra.mxu0 %v2223_v39  ;;  %v2285_v39 = vld [vmem:[#allocation7 + $0x28] sm:$0xff]  }
  0xb9   :  { %1004 = vmatmul.mubr.bf16.vlgmr.msra.gmra.mrb[4].mxu1 %v2490_v17  ;;  %v2139_v17 = vld [vmem:[#allocation2 + $0x268] ss:$16 sps:$4 sm:$0xff]   ;;  %1497 = vmatprep.subr.bf16.mxu0 %v2228_v44 }
  0xba   :  { %1013 = vmatpush1.bf16.msra.mxu1 %v2130_v16  ;;  %1044 = vmatprep.mubr.bf16.mxu1 %v2480_v58  ;;  %v2142_v58 = vld [vmem:[#allocation2 + $0x288] ss:$16 sps:$4 sm:$0xff]  }
  0xbb   :  { %1014 = vmatprep.subr.bf16.mxu1 %v2135_v18  ;;  %v2226_v18 = vld [vmem:[#allocation5 + $0x100] ss:$8 sps:$4 sm:$0xff]   ;;  %v2247_v44 = vld [vmem:[#allocation5 + $0x170] ss:$8 sps:$4 sm:$0xff]  }
  0xbe   :  { %1015 = vmatpush1.bf16.msra.mxu1 %v2133_v22  ;;  %v2275_v22 = vld [vmem:[#allocation7] sm:$0xff]  }
  0xbf   :  { %1016 = vmatprep.subr.bf16.mxu1 %v2138_v23  ;;  %v2276_v23 = vld [vmem:[#allocation7 + $0x48] sm:$0xff]  }
  0xc2   :  { %1017 = vmatpush1.bf16.msra.mxu1 %v2136_v26  ;;  %v2234_v26 = vld [vmem:[#allocation5 + $0x124] ss:$8 sps:$4 sm:$0xff]  }
  0xc3   :  { %1018 = vmatprep.subr.bf16.mxu1 %v2141_v27  ;;  %v2278_v27 = vld [vmem:[#allocation7 + $0x50] sm:$0xff]  }
  0xc6   :  { %1019 = vmatpush1.bf16.msra.mxu1 %v2139_v17  ;;  %v2279_v17 = vld [vmem:[#allocation7 + $0x10] sm:$0xff]  }
  0xc7   :  { %1020 = vmatprep.subr.bf16.mxu1 %v2144_v29  ;;  %v2237_v29 = vld [vmem:[#allocation5 + $0x134] ss:$8 sps:$4 sm:$0xff]  }
  0xca   :  { %1021 = vmatpush1.bf16.msra.mxu1 %v2142_v58  ;;  %v2280_v58 = vld [vmem:[#allocation7 + $0x58] sm:$0xff]  }
  0xcb   :  { %1022 = vmatprep.subr.bf16.mxu1 %v2147_v30  ;;  %v2235_v30 = vld [vmem:[#allocation5 + $0x130] ss:$8 sps:$4 sm:$0xff]  }
  0xce   :  { %1023 = vmatpush1.bf16.msra.mxu1 %v2145_v31  ;;  %v2281_v31 = vld [vmem:[#allocation7 + $0x18] sm:$0xff]  }
  0xcf   :  { %1024 = vmatprep.subr.bf16.mxu1 %v2150_v32  ;;  %v2240_v32 = vld [vmem:[#allocation5 + $0x144] ss:$8 sps:$4 sm:$0xff]  }
  0xd2   :  { %1025 = vmatpush1.bf16.msra.mxu1 %v2148_v34  ;;  %v2238_v34 = vld [vmem:[#allocation5 + $0x140] ss:$8 sps:$4 sm:$0xff]  }
  0xd3   :  { %1026 = vmatprep.subr.bf16.mxu1 %v2153_v36  ;;  %v2243_v36 = vld [vmem:[#allocation5 + $0x154] ss:$8 sps:$4 sm:$0xff]  }
  0xd6   :  { %1027 = vmatpush1.bf16.msra.mxu1 %v2151_v38  ;;  %v2241_v38 = vld [vmem:[#allocation5 + $0x150] ss:$8 sps:$4 sm:$0xff]  }
  0xd7   :  { %1028 = vmatprep.subr.bf16.mxu1 %v2156_v41  ;;  %v2246_v41 = vld [vmem:[#allocation5 + $0x164] ss:$8 sps:$4 sm:$0xff]  }
  0xda   :  { %1029 = vmatpush1.bf16.msra.mxu1 %v2154_v42  ;;  %v2244_v42 = vld [vmem:[#allocation5 + $0x160] ss:$8 sps:$4 sm:$0xff]  }
  0xdb   :  { %1030 = vmatprep.subr.bf16.mxu1 %v2159_v43  ;;  %v2249_v43 = vld [vmem:[#allocation5 + $0x174] ss:$8 sps:$4 sm:$0xff]  }
  0xde   :  { %1031 = vmatpush1.bf16.msra.mxu1 %v2157_v47  ;;  %v2252_v47 = vld [vmem:[#allocation5 + $0x184] ss:$8 sps:$4 sm:$0xff]  }
  0xdf   :  { %1032 = vmatprep.subr.bf16.mxu1 %v2162_v48  ;;  %v2250_v48 = vld [vmem:[#allocation5 + $0x180] ss:$8 sps:$4 sm:$0xff]  }
  0xe2   :  { %1033 = vmatpush1.bf16.msra.mxu1 %v2160_v49  ;;  %v2255_v49 = vld [vmem:[#allocation5 + $0x194] ss:$8 sps:$4 sm:$0xff]  }
  0xe3   :  { %1034 = vmatprep.subr.bf16.mxu1 %v2165_v50  ;;  %v2253_v50 = vld [vmem:[#allocation5 + $0x190] ss:$8 sps:$4 sm:$0xff]  }
  0xe6   :  { %1035 = vmatpush1.bf16.msra.mxu1 %v2163_v51  ;;  %v2258_v51 = vld [vmem:[#allocation5 + $0x1a4] ss:$8 sps:$4 sm:$0xff]  }
  0xe7   :  { %1036 = vmatprep.subr.bf16.mxu1 %v2168_v52  ;;  %v2256_v52 = vld [vmem:[#allocation5 + $0x1a0] ss:$8 sps:$4 sm:$0xff]  }
  0xea   :  { %1037 = vmatpush1.bf16.msra.mxu1 %v2166_v53  ;;  %v2261_v53 = vld [vmem:[#allocation5 + $0x1b4] ss:$8 sps:$4 sm:$0xff]  }
  0xeb   :  { %1038 = vmatprep.subr.bf16.mxu1 %v2171_v54  ;;  %v2259_v54 = vld [vmem:[#allocation5 + $0x1b0] ss:$8 sps:$4 sm:$0xff]  }
  0xee   :  { %1039 = vmatpush1.bf16.msra.mxu1 %v2169_v55  ;;  %v2264_v55 = vld [vmem:[#allocation5 + $0x1c4] ss:$8 sps:$4 sm:$0xff]  }
  0xef   :  { %1040 = vmatprep.subr.bf16.mxu1 %v2174_v56  ;;  %v2262_v56 = vld [vmem:[#allocation5 + $0x1c0] ss:$8 sps:$4 sm:$0xff]  }
  0xf2   :  { %1041 = vmatpush1.bf16.msra.mxu1 %v2172_v57  ;;  %v2267_v57 = vld [vmem:[#allocation5 + $0x1d4] ss:$8 sps:$4 sm:$0xff]  }
  0xf3   :  { %1042 = vmatprep.subr.bf16.mxu1 %v2177_v59  ;;  %v2265_v59 = vld [vmem:[#allocation5 + $0x1d0] ss:$8 sps:$4 sm:$0xff]  }
  0xf6   :  { %1043 = vmatpush1.bf16.msra.mxu1 %v2175_v60  ;;  %v2270_v60 = vld [vmem:[#allocation5 + $0x1e4] ss:$8 sps:$4 sm:$0xff]  }
  0xf7   :  { %1939 = vmatprep.subr.bf16.mxu1 %v2274_v21 }
  0xf9   :  { %1045 = vmatmul.mubr.bf16.vlgmr.msra.gmra.mrb[4].mxu1 %v2492_v19 }
  0xfa   :  { %1940 = vmatpush3.bf16.msra.mxu1 %v2275_v22 }
  0xfb   :  { %1941 = vmatprep.subr.bf16.mxu1 %v2276_v23 }
  0xfe   :  { %1942 = vmatpush3.bf16.msra.mxu1 %v2277_v25 }
  0xff   :  { %1943 = vmatprep.subr.bf16.mxu1 %v2278_v27 }
 0x102   :  { %1944 = vmatpush3.bf16.msra.mxu1 %v2279_v17 }
 0x103   :  { %1945 = vmatprep.subr.bf16.mxu1 %v2280_v58 }
 0x106   :  { %1946 = vmatpush3.bf16.msra.mxu1 %v2281_v31 }
 0x107   :  { %1947 = vmatprep.subr.bf16.mxu1 %v2282_v33 }
 0x10a   :  { %1948 = vmatpush3.bf16.msra.mxu1 %v2283_v35 }
 0x10b   :  { %1949 = vmatprep.subr.bf16.mxu1 %v2284_v37 }
 0x10e   :  { %1950 = vmatpush3.bf16.msra.mxu1 %v2285_v39 }
 0x14c   :  { %v923_v0 = vpop.f32.mrb[0].mxu1 }
 0x14d   :  { %v924_v1 = vadd.f32 %v923_v0, %v872_v62  ;;  %v925_v2 = vpop.f32.mrb[1].mxu1  ;;  %v2268_v62 = vld [vmem:[#allocation5 + $0x1e0] ss:$8 sps:$4 sm:$0xff]   ;;  %v2271_v0 = vld [vmem:[#allocation5 + $0x1f0] ss:$8 sps:$4 sm:$0xff]  }
 0x14e   :  { %v926_v3 = vadd.f32 %v925_v2, %v876_v63  ;;  %v927_v5 = vpop.f32.mrb[2].mxu1  ;;  %v964_v6 = vpop.f32.mrb[0].mxu0  ;;  %v2273_v63 = vld [vmem:[#allocation5 + $0x1f4] ss:$8 sps:$4 sm:$0xff]   ;;  %v884_v2 = vrot.slane %v2502_v61, %v90_v46  ;;  %v73_v46 = vld [vmem:[%s2538_s4 + $0x4] sm:$0x3] }
 0x14f   :  { %v965_v7 = vadd.f32 %v964_v6, %v924_v1  ;;  %v928_v9 = vpop.f32.mrb[3].mxu1  ;;  %v966_v19 = vpop.f32.mrb[1].mxu0  ;;  %v880_v1 = vrot.slane %v2502_v61, %v86_v8  ;;  %v2288_v8 = vld [vmem:[#allocation7 + $0x78] sm:$0xff]   ;;  %v1449_v61 = vrot.slane %v73_v46, %v2484_v4 }
 0x150   :  { %v967_v10 = vadd.f32 %v966_v19, %v926_v3  ;;  %v968_v11 = vpop.f32.mrb[2].mxu0 }
 0x151   :  { %v1053_v12 = vmax.f32 %v965_v7, 0.0  ;;  %v969_v13 = vpop.f32.mrb[3].mxu0 }
 0x152   :  { %v1054_v14 = vmax.f32 %v967_v10, 0.0 }
 0x153   :  { %v1057_v15 = vpack.c.bf16 %v1053_v12, %v1053_v12 }
 0x154   :  { %v1058_v16 = vpack.c.bf16 %v1054_v14, %v1054_v14  ;;  %v2286_v14 = vld [vmem:[#allocation7 + $0x70] sm:$0xff]  }
 0x155   :  { %1951 = vmatprep.subr.bf16.mxu1 %v2286_v14 }
 0x156   :  { %1488 = vmatprep.mubr.bf16.mxu0 %v1058_v16  ;;  %v1453_v16 = vrot.slane %v73_v46, %v2468_v45 }
 0x157   :  { %1489 = vmatmul.mubr.bf16.vlgmr.msra.gmra.mrb[4].mxu0 %v1057_v15  ;;  %v2287_v15 = vld [vmem:[#allocation7 + $0x30] sm:$0xff]  }
 0x158   :  { %1498 = vmatpush1.bf16.msra.mxu0 %v2226_v18  ;;  %1952 = vmatpush3.bf16.msra.mxu1 %v2287_v15 }
 0x159   :  { %1499 = vmatprep.subr.bf16.mxu0 %v2231_v20  ;;  %1953 = vmatprep.subr.bf16.mxu1 %v2288_v8 }
 0x15c   :  { %1500 = vmatpush1.bf16.msra.mxu0 %v2229_v24  ;;  %1954 = vmatpush3.bf16.msra.mxu1 %v2289_v40 }
 0x15d   :  { %1501 = vmatprep.subr.bf16.mxu0 %v2234_v26 }
 0x160   :  { %1502 = vmatpush1.bf16.msra.mxu0 %v2232_v28 }
 0x161   :  { %1503 = vmatprep.subr.bf16.mxu0 %v2237_v29  ;;  %v74_v29 = vld [vmem:[%s2538_s4 + $0x6] sm:$0x1] }
 0x164   :  { %1504 = vmatpush1.bf16.msra.mxu0 %v2235_v30 }
 0x165   :  { %1505 = vmatprep.subr.bf16.mxu0 %v2240_v32 }
 0x168   :  { %1506 = vmatpush1.bf16.msra.mxu0 %v2238_v34 }
 0x169   :  { %1507 = vmatprep.subr.bf16.mxu0 %v2243_v36 }
 0x16c   :  { %1508 = vmatpush1.bf16.msra.mxu0 %v2241_v38 }
 0x16d   :  { %1509 = vmatprep.subr.bf16.mxu0 %v2246_v41 }
 0x170   :  { %1510 = vmatpush1.bf16.msra.mxu0 %v2244_v42 }
 0x171   :  { %1511 = vmatprep.subr.bf16.mxu0 %v2249_v43 }
 0x174   :  { %1512 = vmatpush1.bf16.msra.mxu0 %v2247_v44 }
 0x175   :  { %1513 = vmatprep.subr.bf16.mxu0 %v2252_v47 }
 0x178   :  { %1514 = vmatpush1.bf16.msra.mxu0 %v2250_v48 }
 0x179   :  { %1515 = vmatprep.subr.bf16.mxu0 %v2255_v49 }
 0x17c   :  { %1516 = vmatpush1.bf16.msra.mxu0 %v2253_v50 }
 0x17d   :  { %1517 = vmatprep.subr.bf16.mxu0 %v2258_v51 }
 0x180   :  { %1518 = vmatpush1.bf16.msra.mxu0 %v2256_v52 }
 0x181   :  { %1519 = vmatprep.subr.bf16.mxu0 %v2261_v53 }
 0x184   :  { %1520 = vmatpush1.bf16.msra.mxu0 %v2259_v54 }
 0x185   :  { %1521 = vmatprep.subr.bf16.mxu0 %v2264_v55 }
 0x188   :  { %1522 = vmatpush1.bf16.msra.mxu0 %v2262_v56 }
 0x189   :  { %1523 = vmatprep.subr.bf16.mxu0 %v2267_v57 }
 0x18c   :  { %1524 = vmatpush1.bf16.msra.mxu0 %v2265_v59 }
 0x18d   :  { %1525 = vmatprep.subr.bf16.mxu0 %v2270_v60 }
 0x190   :  { %1526 = vmatpush1.bf16.msra.mxu0 %v2268_v62 }
 0x191   :  { %1527 = vmatprep.subr.bf16.mxu0 %v2273_v63 }
 0x194   :  { %1528 = vmatpush1.bf16.msra.mxu0 %v2271_v0 }
 0x1cc   :  { %v1046_v3 = vpop.f32.mrb[4].mxu1 }
 0x1cd   :  { %v1965_v5 = vadd.f32 %v1046_v3, %v880_v1  ;;  %v1048_v6 = vpop.f32.mrb[5].mxu1 }
 0x1ce   :  { %v1966_v7 = vadd.f32 %v1048_v6, %v884_v2  ;;  %v1050_v9 = vpop.f32.mrb[6].mxu1 }
 0x1cf   :  { %v1055_v19 = vmax.f32 %v1965_v5, 0.0  ;;  %v1051_v10 = vpop.f32.mrb[7].mxu1 }
 0x1d0   :  { %v1056_v11 = vmax.f32 %v1966_v7, 0.0 }
 0x1d1   :  { %v1059_v13 = vpack.c.bf16 %v1055_v19, %v1055_v19 }
 0x1d2   :  { %v1060_v12 = vpack.c.bf16 %v1056_v11, %v1056_v11 }
 0x1d4   :  { %1529 = vmatprep.mubr.bf16.mxu0 %v1060_v12 }
 0x1d5   :  { %1530 = vmatmul.mubr.bf16.vlgmr.msra.gmra.mrb[4].mxu0 %v1059_v13 }
 0x2a8   :  { %v1531_v18 = vpop.f32.mrb[4].mxu0 }
 0x2a9   :  { %v1967_v20 = vadd.f32 %v1531_v18, %v1449_v61  ;;  %v1533_v21 = vpop.f32.mrb[5].mxu0 }
 0x2aa   :  { %v1968_v22 = vadd.f32 %v1533_v21, %v1453_v16  ;;  %v1535_v23 = vpop.f32.mrb[6].mxu0 }
 0x2ab   :  { %v1538_v24 = vmax.f32 %v1967_v20, 0.0  ;;  %v1536_v25 = vpop.f32.mrb[7].mxu0 }
 0x2ac   :  { %v1539_v26 = vmax.f32 %v1968_v22, 0.0 }
 0x2ad   :  { %v1540_v28 = vpack.c.bf16 %v1538_v24, %v1538_v24 }
 0x2ae   :  { %v1541_v27 = vpack.c.bf16 %v1539_v26, %v1539_v26 }
 0x2b0   :  { %1702 = vmatprep.mubr.bf16.mxu1 %v1541_v27 }
 0x2b1   :  { %1703 = vmatmul.mubr.bf16.vlgmr.msra.gmra.mrb[8].mxu1 %v1540_v28 }
 0x384   :  { %v1955_v17 = vpop.f32.mrb[8].mxu1 }
 0x385   :  { %v1956_v4 = vpop.f32.mrb[9].mxu1 }
 0x386   :  { %v1957_v45 = vadd.f32 %v1956_v4, %v1955_v17  ;;  %v1958_v58 = vpop.f32.mrb[10].mxu1 }
 0x387   :  { %v1959_v30 = vpop.f32.mrb[11].mxu1 }
 0x388   :  { %v1705_v31 = vadd.f32 %v1957_v45, %v74_v29 }
 0x38a   :  { %1710 = vst [vmem:[#allocation8] sm:$0x1] %v1705_v31 }
 0x38b   :  { %2367 = shalt.err (!%p2364_p0)
}
 0x38c   :  { %s2368_s4 = scalar_lea.hbm %s2540_s6, 16 }
 0x38d   :  { %p2369_p1 = scmp.ne.s32.totalorder %s2540_s6, %s2368_s4  ;;  %p2372_p2 = scmp.lt.u32.totalorder %s2368_s4, %s2540_s6 }
 0x38f   :  { %p2374_p3 = pnand %p2372_p2, %p2369_p1 }
 0x391   :  { %2377 = shalt.err (!%p2374_p3)
}
 0x392   :  { %1722 = dma.vmem_to_hbm [thread:$0]  %s1720_s2, 16, %s2540_s6, [#allocation4]  }
 0x393   :  { %2382 = dma.done.wait [#allocation4], 16  }
 0x394   :  { %2383 = vsyncadd [#allocation4], 4294967280 }
 0x395   :  { %1728 = vsyncpa [#allocation3], 1 }
 0x396   :  { %1729 = vsyncpa [#allocation6], 1 }
 0x397   :  { %1730 = vsyncpa [#allocation4], 1 }

</bundles_post_ra>
